<compile_context>
chip_gen: v7x
topology: tpu7x:2x2x1
jax: 0.10.0
libtpu: 0.0.40
codegen_flags: <defaults>
</compile_context>

<pallas_src>
import functools

import jax
import jax.numpy as jnp
from jax.experimental import pallas as pl
from jax.experimental.pallas import tpu as pltpu

LANE = 128           # TPU lane width
HIDDEN_LOGICAL = 64  # matches nn.Linear(input, 64) in the PyTorch module
HIDDEN_PADDED = 128  # zero-padded hidden width (lane-dense)


def _round_up(n, m):
    return ((n + m - 1) // m) * m


def _cdiv(a, b):
    return -(-a // b)


def dqn_kernel(x_ref, w1_ref, b1_ref, w2_ref, b2_ref, w3_ref, b3_ref, o_ref, *, out_size):
    # Three MXU matmuls (bf16 in, f32 accumulate) + f32 bias add + ReLU; all operands VMEM-resident.
    x = x_ref[...]
    h1 = jnp.dot(x, w1_ref[...], preferred_element_type=jnp.float32) + b1_ref[...]
    h1 = jnp.maximum(h1, 0.0).astype(w2_ref.dtype)
    h2 = jnp.dot(h1, w2_ref[...], preferred_element_type=jnp.float32) + b2_ref[...]
    h2 = jnp.maximum(h2, 0.0).astype(w3_ref.dtype)
    out = jnp.dot(h2, w3_ref[...], preferred_element_type=jnp.float32) + b3_ref[...]
    # Store only the logical output columns: narrow DMA, no 128-lane write amplification.
    o_ref[...] = out[:, :out_size].astype(o_ref.dtype)


@functools.partial(jax.jit, static_argnames=("out_size", "batch_tile"))
def dqn_forward(x, params, *, out_size, batch_tile=2048):
    """x: (B, input_size) float32 (cast to bf16 internally).
    params: w1/w2/w3 bf16 in padded (in, out_padded) layout, biases f32 shaped (1, out_padded).
    Returns (B, out_size) float32."""
    w1, b1 = params["w1"], params["b1"]
    w2, b2 = params["w2"], params["b2"]
    w3, b3 = params["w3"], params["b3"]

    B, d_in = x.shape
    hp = w1.shape[1]  # padded hidden (128)

    # Halve the dominant HBM read stream; accumulation stays f32 in the kernel.
    x = x.astype(w1.dtype)

    # Balanced batch tiling: waste < 8 rows per step; force >= 2 steps (v7x: 2 TensorCores)
    # whenever the batch is big enough to split.
    n_steps = _cdiv(B, batch_tile)
    if n_steps == 1 and B >= 16:
        n_steps = 2
    tb = _round_up(_cdiv(B, n_steps), 8)
    bp = n_steps * tb
    if bp != B:
        x = jnp.pad(x, ((0, bp - B), (0, 0)))
    grid = (n_steps,)

    # Weights/biases: constant index_map -> DMA'd once, resident in VMEM across grid steps.
    def resident(a):
        return pl.BlockSpec(a.shape, lambda i: (0,) * a.ndim, memory_space=pltpu.VMEM)

    param_bytes = sum(int(a.size) * a.dtype.itemsize for a in (w1, b1, w2, b2, w3, b3))
    flops = 2 * bp * (d_in * hp + hp * hp + hp * hp)
    bytes_accessed = bp * d_in * x.dtype.itemsize + bp * out_size * 4 + param_bytes

    # Tile VMEM footprint (double-buffered x/out + resident params + headroom). Only needs an
    # explicit limit if it would exceed the v5e 16 MiB scoped default.
    vmem_needed = (2 * (tb * d_in * x.dtype.itemsize + tb * out_size * 4)
                   + param_bytes + (2 << 20))
    vmem_limit = int(min(max(vmem_needed, 16 * 1024 * 1024), 48 * 1024 * 1024))

    out_padded_batch = pl.pallas_call(
        functools.partial(dqn_kernel, out_size=out_size),
        out_shape=jax.ShapeDtypeStruct((bp, out_size), jnp.float32),
        grid=grid,
        in_specs=[
            pl.BlockSpec((tb, d_in), lambda i: (i, 0), memory_space=pltpu.VMEM),
            resident(w1), resident(b1),
            resident(w2), resident(b2),
            resident(w3), resident(b3),
        ],
        out_specs=pl.BlockSpec((tb, out_size), lambda i: (i, 0), memory_space=pltpu.VMEM),
        compiler_params=pltpu.CompilerParams(
            dimension_semantics=("parallel",),
            vmem_limit_bytes=vmem_limit),
        cost_estimate=pl.CostEstimate(flops=flops, transcendentals=0,
                                      bytes_accessed=bytes_accessed),
    )(x, w1, b1, w2, b2, w3, b3)

    # Only batch padding left to remove (output lanes already narrowed inside the kernel).
    return out_padded_batch[:B, :]


def init_dqn_params(key, input_size, output_size, hidden=HIDDEN_LOGICAL):
    """PyTorch nn.Linear default init U[-1/sqrt(fan_in), 1/sqrt(fan_in)].
    Weights stored as (in_features, out_features) bf16, zero-padded lane-dense:
      w1: (input_size, 128), w2: (128, 128), w3: (128, 128); biases f32 (1, 128).
    Padded rows/cols are zero so they contribute nothing (relu(0)=0, zero weight rows)."""
    keys = jax.random.split(key, 6)
    hp = HIDDEN_PADDED
    op = _round_up(output_size, LANE)

    def linear(kw, kb, fan_in, fan_out, pad_in, pad_out):
        bound = 1.0 / jnp.sqrt(jnp.float32(fan_in))
        w = jax.random.uniform(kw, (fan_in, fan_out), jnp.float32, -bound, bound)
        b = jax.random.uniform(kb, (1, fan_out), jnp.float32, -bound, bound)
        w = jnp.pad(w, ((0, pad_in - fan_in), (0, pad_out - fan_out))).astype(jnp.bfloat16)
        b = jnp.pad(b, ((0, 0), (0, pad_out - fan_out)))  # biases stay f32
        return w, b

    w1, b1 = linear(keys[0], keys[1], input_size, hidden, input_size, hp)
    w2, b2 = linear(keys[2], keys[3], hidden, hidden, hp, hp)
    w3, b3 = linear(keys[4], keys[5], hidden, output_size, hp, op)
    return dict(w1=w1, b1=b1, w2=w2, b2=b2, w3=w3, b3=b3)


def dqn_reference_padded(x, params, out_size):
    """Exact mirror of the kernel math (bf16 operands, f32 accumulation) on the padded params."""
    h = x.astype(params["w1"].dtype)
    h = jnp.maximum(jnp.dot(h, params["w1"], preferred_element_type=jnp.float32) + params["b1"], 0.0)
    h = h.astype(params["w2"].dtype)
    h = jnp.maximum(jnp.dot(h, params["w2"], preferred_element_type=jnp.float32) + params["b2"], 0.0)
    h = h.astype(params["w3"].dtype)
    out = jnp.dot(h, params["w3"], preferred_element_type=jnp.float32) + params["b3"]
    return out[:, :out_size]


def dqn_reference_unpadded(x, params, input_size, out_size, hidden=HIDDEN_LOGICAL):
    """f32 math on the logical (unpadded, PyTorch-equivalent) weights — catches padding bugs."""
    w1 = params["w1"][:input_size, :hidden].astype(jnp.float32)
    b1 = params["b1"][:, :hidden]
    w2 = params["w2"][:hidden, :hidden].astype(jnp.float32)
    b2 = params["b2"][:, :hidden]
    w3 = params["w3"][:hidden, :out_size].astype(jnp.float32)
    b3 = params["b3"][:, :out_size]
    h1 = jnp.maximum(x @ w1 + b1, 0.0)
    h2 = jnp.maximum(h1 @ w2 + b2, 0.0)
    return h2 @ w3 + b3


if __name__ == "__main__":
    key = jax.random.PRNGKey(0)
    k_x, k_p = jax.random.split(key)

    batch, input_size, output_size = 8, 16, 4
    x = jax.random.normal(k_x, (batch, input_size), jnp.float32)
    params = init_dqn_params(k_p, input_size, output_size)

    out = jax.block_until_ready(dqn_forward(x, params, out_size=output_size))
    assert out.shape == (batch, output_size)
    # Exact-math mirror (same bf16/f32 recipe) -> tight tolerance.
    ref_pad = dqn_reference_padded(x, params, output_size)
    assert jnp.allclose(out, ref_pad, atol=1e-3, rtol=1e-3)
    # Unpadded f32 PyTorch-layout reference -> bounded only by bf16 activation quantization.
    ref_unp = dqn_reference_unpadded(x, params, input_size, output_size)
    assert jnp.allclose(out, ref_unp, atol=1e-1, rtol=5e-2)

    # Exercise the multi-step grid (>=2 tiles) and batch-padding path.
    big_batch = 1000  # not a multiple of 8; splits into 2 balanced tiles of 504 rows
    xb = jax.random.normal(k_x, (big_batch, input_size), jnp.float32)
    out_big = jax.block_until_ready(dqn_forward(xb, params, out_size=output_size))
    assert out_big.shape == (big_batch, output_size)
    assert jnp.allclose(out_big, dqn_reference_padded(xb, params, output_size),
                        atol=1e-3, rtol=1e-3)
    assert jnp.allclose(out_big, dqn_reference_unpadded(xb, params, input_size, output_size),
                        atol=1e-1, rtol=5e-2)

    print("KERNEL_OK")
</pallas_src>

<mosaic_0001>
module attributes {stable_mosaic.version = 11 : i64} {
  func.func @dqn_kernel(%arg0: i32, %arg1: memref<8x16xbf16, #tpu.memory_space<vmem>>, %arg2: memref<16x128xbf16, #tpu.memory_space<vmem>>, %arg3: memref<1x128xf32, #tpu.memory_space<vmem>>, %arg4: memref<128x128xbf16, #tpu.memory_space<vmem>>, %arg5: memref<1x128xf32, #tpu.memory_space<vmem>>, %arg6: memref<128x128xbf16, #tpu.memory_space<vmem>>, %arg7: memref<1x128xf32, #tpu.memory_space<vmem>>, %arg8: memref<8x4xf32, #tpu.memory_space<vmem>>) attributes {dimension_semantics = [#tpu.dimension_semantics<parallel>], iteration_bounds = array<i64: 1>, scalar_prefetch = 0 : i64, scratch_operands = 0 : i64, tpu.core_type = #tpu.core_type<tc>, window_params = [{transform_indices = @transform_0, window_bounds = array<i64: 8, 16>}, {pipeline_mode = #tpu.pipeline_mode<synchronous>, transform_indices = @transform_1, window_bounds = array<i64: 16, 128>}, {pipeline_mode = #tpu.pipeline_mode<synchronous>, transform_indices = @transform_2, window_bounds = array<i64: 1, 128>}, {pipeline_mode = #tpu.pipeline_mode<synchronous>, transform_indices = @transform_3, window_bounds = array<i64: 128, 128>}, {pipeline_mode = #tpu.pipeline_mode<synchronous>, transform_indices = @transform_4, window_bounds = array<i64: 1, 128>}, {pipeline_mode = #tpu.pipeline_mode<synchronous>, transform_indices = @transform_5, window_bounds = array<i64: 128, 128>}, {pipeline_mode = #tpu.pipeline_mode<synchronous>, transform_indices = @transform_6, window_bounds = array<i64: 1, 128>}, {transform_indices = @transform_7, window_bounds = array<i64: 8, 4>}]} {
    %c0 = arith.constant 0 : index
    %c0_0 = arith.constant 0 : index
    %0 = vector.load %arg1[%c0, %c0_0] : memref<8x16xbf16, #tpu.memory_space<vmem>>, vector<8x16xbf16>
    %c0_1 = arith.constant 0 : index
    %c0_2 = arith.constant 0 : index
    %1 = vector.load %arg2[%c0_1, %c0_2] : memref<16x128xbf16, #tpu.memory_space<vmem>>, vector<16x128xbf16>
    %cst = arith.constant dense<0.000000e+00> : vector<8x128xf32>
    %2 = tpu.matmul %0, %1, %cst {dimension_numbers = #tpu.dot_dimension_numbers<[1], [0], [0], [1], [0, 0, 1, 1], [], []>} : vector<8x16xbf16>, vector<16x128xbf16>, vector<8x128xf32> -> vector<8x128xf32>
    %c0_3 = arith.constant 0 : index
    %c0_4 = arith.constant 0 : index
    %3 = vector.load %arg3[%c0_3, %c0_4] : memref<1x128xf32, #tpu.memory_space<vmem>>, vector<1x128xf32>
    %4 = vector.broadcast %3 : vector<1x128xf32> to vector<8x128xf32>
    %5 = arith.addf %2, %4 : vector<8x128xf32>
    %cst_5 = arith.constant 0.000000e+00 : f32
    %6 = vector.broadcast %cst_5 : f32 to vector<8x128xf32>
    %7 = arith.maximumf %5, %6 : vector<8x128xf32>
    %8 = arith.truncf %7 : vector<8x128xf32> to vector<8x128xbf16>
    %c0_6 = arith.constant 0 : index
    %c0_7 = arith.constant 0 : index
    %9 = vector.load %arg4[%c0_6, %c0_7] : memref<128x128xbf16, #tpu.memory_space<vmem>>, vector<128x128xbf16>
    %cst_8 = arith.constant dense<0.000000e+00> : vector<8x128xf32>
    %10 = tpu.matmul %8, %9, %cst_8 {dimension_numbers = #tpu.dot_dimension_numbers<[1], [0], [0], [1], [0, 0, 1, 1], [], []>} : vector<8x128xbf16>, vector<128x128xbf16>, vector<8x128xf32> -> vector<8x128xf32>
    %c0_9 = arith.constant 0 : index
    %c0_10 = arith.constant 0 : index
    %11 = vector.load %arg5[%c0_9, %c0_10] : memref<1x128xf32, #tpu.memory_space<vmem>>, vector<1x128xf32>
    %12 = vector.broadcast %11 : vector<1x128xf32> to vector<8x128xf32>
    %13 = arith.addf %10, %12 : vector<8x128xf32>
    %cst_11 = arith.constant 0.000000e+00 : f32
    %14 = vector.broadcast %cst_11 : f32 to vector<8x128xf32>
    %15 = arith.maximumf %13, %14 : vector<8x128xf32>
    %16 = arith.truncf %15 : vector<8x128xf32> to vector<8x128xbf16>
    %c0_12 = arith.constant 0 : index
    %c0_13 = arith.constant 0 : index
    %17 = vector.load %arg6[%c0_12, %c0_13] : memref<128x128xbf16, #tpu.memory_space<vmem>>, vector<128x128xbf16>
    %cst_14 = arith.constant dense<0.000000e+00> : vector<8x128xf32>
    %18 = tpu.matmul %16, %17, %cst_14 {dimension_numbers = #tpu.dot_dimension_numbers<[1], [0], [0], [1], [0, 0, 1, 1], [], []>} : vector<8x128xbf16>, vector<128x128xbf16>, vector<8x128xf32> -> vector<8x128xf32>
    %c0_15 = arith.constant 0 : index
    %c0_16 = arith.constant 0 : index
    %19 = vector.load %arg7[%c0_15, %c0_16] : memref<1x128xf32, #tpu.memory_space<vmem>>, vector<1x128xf32>
    %20 = vector.broadcast %19 : vector<1x128xf32> to vector<8x128xf32>
    %21 = arith.addf %18, %20 : vector<8x128xf32>
    %22 = vector.extract_strided_slice %21 {offsets = [0, 0], sizes = [8, 4], strides = [1, 1]} : vector<8x128xf32> to vector<8x4xf32>
    %c0_17 = arith.constant 0 : index
    %c0_18 = arith.constant 0 : index
    %23 = vector.load %arg8[%c0_17, %c0_18] : memref<8x4xf32, #tpu.memory_space<vmem>>, vector<8x4xf32>
    tpu.vector_store %arg8[%c0_17, %c0_18], %22 {strides = array<i32>} : memref<8x4xf32, #tpu.memory_space<vmem>>, vector<8x4xf32>,
    return
  }
  func.func @transform_0(%arg0: i32) -> (i32, i32) {
    %c0_i32 = arith.constant 0 : i32
    %c0_i32_0 = arith.constant 0 : i32
    return %arg0, %c0_i32 : i32, i32
  }
  func.func @transform_1(%arg0: i32) -> (i32, i32) {
    %c0_i32 = arith.constant 0 : i32
    %c0_i32_0 = arith.constant 0 : i32
    %c0_i32_1 = arith.constant 0 : i32
    return %c0_i32, %c0_i32_0 : i32, i32
  }
  func.func @transform_2(%arg0: i32) -> (i32, i32) {
    %c0_i32 = arith.constant 0 : i32
    %c0_i32_0 = arith.constant 0 : i32
    %c0_i32_1 = arith.constant 0 : i32
    return %c0_i32, %c0_i32_0 : i32, i32
  }
  func.func @transform_3(%arg0: i32) -> (i32, i32) {
    %c0_i32 = arith.constant 0 : i32
    %c0_i32_0 = arith.constant 0 : i32
    %c0_i32_1 = arith.constant 0 : i32
    return %c0_i32, %c0_i32_0 : i32, i32
  }
  func.func @transform_4(%arg0: i32) -> (i32, i32) {
    %c0_i32 = arith.constant 0 : i32
    %c0_i32_0 = arith.constant 0 : i32
    %c0_i32_1 = arith.constant 0 : i32
    return %c0_i32, %c0_i32_0 : i32, i32
  }
  func.func @transform_5(%arg0: i32) -> (i32, i32) {
    %c0_i32 = arith.constant 0 : i32
    %c0_i32_0 = arith.constant 0 : i32
    %c0_i32_1 = arith.constant 0 : i32
    return %c0_i32, %c0_i32_0 : i32, i32
  }
  func.func @transform_6(%arg0: i32) -> (i32, i32) {
    %c0_i32 = arith.constant 0 : i32
    %c0_i32_0 = arith.constant 0 : i32
    %c0_i32_1 = arith.constant 0 : i32
    return %c0_i32, %c0_i32_0 : i32, i32
  }
  func.func @transform_7(%arg0: i32) -> (i32, i32) {
    %c0_i32 = arith.constant 0 : i32
    %c0_i32_0 = arith.constant 0 : i32
    return %arg0, %c0_i32 : i32, i32
  }
}

</mosaic_0001>

<bundles_post_ra>
// kernel: dqn_forward.1
= control target key start
LH: loop header
LB: loop body
LE: loop exit
PB: predicated region body
PF: predicated region fallthrough
CT: control target
= control target key end

     0   :  { %12 = vsyncpa [#allocation3], 0  ;;  %s615_s0 = inlined_call_operand.vmem [shape: bf16[8,16], index: 0, kind: input, shape index: {}]   ;;  %s616_s1 = inlined_call_operand.vmem [shape: bf16[16,128], index: 1, kind: input, shape index: {}]   ;;  %s617_s2 = inlined_call_operand.vmem [shape: f32[1,128], index: 2, kind: input, shape index: {}]   ;;  %s618_s3 = inlined_call_operand.hbm [shape: bf16[128,128], index: 3, kind: input, shape index: {}]   ;;  %s619_s4 = inlined_call_operand.vmem [shape: f32[1,128], index: 4, kind: input, shape index: {}]   ;;  %s620_s5 = inlined_call_operand.hbm [shape: bf16[128,128], index: 5, kind: input, shape index: {}]   ;;  %s621_s6 = inlined_call_operand.vmem [shape: f32[1,128], index: 6, kind: input, shape index: {}]   ;;  %s622_s7 = inlined_call_operand.vmem [shape: f32[8,4], index: 7, kind: output, shape index: {}]  }
   0x1   :  { %13 = vsyncpa [#allocation5], 0  ;;  %s507_s24 = smov [#allocation2]   ;;  %s459_s28 = scalar_lea.hbm %s618_s3, 1024 }
   0x2   :  { %s25_s25 = sshll.u32 %s507_s24, 4  ;;  %p460_p0 = scmp.ne.s32.totalorder %s618_s3, %s459_s28  ;;  %s26_s25 = int_to_ptr.vmem [resolvable:$true] %s25_s25 }
   0x3   :  { %p463_p1 = scmp.lt.u32.totalorder %s459_s28, %s618_s3 }
   0x5   :  { %p465_p2 = pnand %p463_p1, %p460_p0 }
   0x7   :  { %468 = shalt.err (!%p465_p2)
}
   0x8   :  { %s469_s10 = scalar_lea.vmem %s26_s25, 1024  ;;  %p474_p4 = scmp.lt.s32.totalorder %s26_s25, %s26_s25 }
   0x9   :  { %p470_p3 = scmp.ne.s32.totalorder %s26_s25, %s469_s10  ;;  %p475_p5 = scmp.lt.s32.totalorder %s469_s10, %s469_s10 }
   0xb   :  { %p476_p6 = por %p475_p5, %p474_p4 }
   0xd   :  { %p477_p7 = pnand %p476_p6, %p470_p3 }
   0xf   :  { %480 = shalt.err (!%p477_p7)
}
  0x10   :  { %s508_s11 = smov 64   ;;  %s509_s12 = smov 4  }
  0x11   :  { %31 = dma.hbm_to_vmem [thread:$0]  %s618_s3, 1024, %s26_s25, [#allocation3], %s508_s11, %s508_s11, %s509_s12  }
  0x12   :  { %s510_s15 = smov [#allocation4]   ;;  %s481_s19 = scalar_lea.hbm %s620_s5, 1024 }
  0x13   :  { %s39_s16 = sshll.u32 %s510_s15, 4  ;;  %p482_p8 = scmp.ne.s32.totalorder %s620_s5, %s481_s19  ;;  %s40_s16 = int_to_ptr.vmem [resolvable:$true] %s39_s16 }
  0x14   :  { %p485_p9 = scmp.lt.u32.totalorder %s481_s19, %s620_s5 }
  0x16   :  { %p487_p10 = pnand %p485_p9, %p482_p8 }
  0x18   :  { %490 = shalt.err (!%p487_p10)
}
  0x19   :  { %s491_s24 = scalar_lea.vmem %s40_s16, 1024  ;;  %p496_p12 = scmp.lt.s32.totalorder %s40_s16, %s40_s16 }
  0x1a   :  { %p492_p11 = scmp.ne.s32.totalorder %s40_s16, %s491_s24  ;;  %p497_p13 = scmp.lt.s32.totalorder %s491_s24, %s491_s24 }
  0x1c   :  { %p498_p0 = por %p497_p13, %p496_p12 }
  0x1e   :  { %p499_p1 = pnand %p498_p0, %p492_p11 }
  0x20   :  { %502 = shalt.err (!%p499_p1)
}
  0x21   :  { %45 = dma.hbm_to_vmem [thread:$0]  %s620_s5, 1024, %s40_s16, [#allocation5], %s508_s11, %s508_s11, %s509_s12  }
  0x22   :  { %503 = dma.done.wait [#allocation3], 1024  }
  0x23   :  { %504 = vsyncadd [#allocation3], 4294966272 }
  0x24   :  { %505 = dma.done.wait [#allocation5], 1024  }
  0x25   :  { %506 = vsyncadd [#allocation5], 4294966272  ;;  %v511_v0 = vmov 0.0   ;;  %vm512_vm0 = vmmov 0   ;;  %v442_v1 = vld [vmem:[%s616_s1] sm:$0xff]   ;;  %vm71_vm1 = vcmask 130048  }
  0x26   :  { %390 = vmatprep.subr.bf16.mxu0 %v511_v0  ;;  %392 = vmatprep.mubr.msk.bf16.mxu0 %vm512_vm0, %v511_v0  ;;  %v55_v2 = vld [vmem:[%s615_s0] sm:$0xf]  ;;  %v443_v3 = vld [vmem:[#allocation2] sm:$0xff]   ;;  %v444_v4 = vld [vmem:[#allocation2 + $0x8] sm:$0xff]   ;;  %vm341_vm2 = vcmask 31744  }
  0x27   :  { %396 = vmatprep.subr.bf16.mxu1 %v511_v0  ;;  %412 = vmatprep.mubr.msk.bf16.mxu1 %vm512_vm0, %v511_v0  ;;  %v445_v5 = vld [vmem:[#allocation2 + $0x10] sm:$0xff]   ;;  %v446_v6 = vld [vmem:[#allocation2 + $0x18] sm:$0xff]   ;;  %v447_v7 = vld [vmem:[#allocation2 + $0x20] sm:$0xff]  }
  0x28   :  { %391 = vmatpush3.bf16.msra.mxu0 %v442_v1  ;;  %397 = vmatpush3.bf16.msra.mxu1 %v443_v3  ;;  %v448_v8 = vld [vmem:[#allocation2 + $0x28] sm:$0xff]   ;;  %v449_v9 = vld [vmem:[#allocation2 + $0x30] sm:$0xff]   ;;  %v450_v10 = vld [vmem:[#allocation2 + $0x38] sm:$0xff]  }
  0x29   :  { %416 = vmatprep.subr.bf16.mxu0 %v511_v0  ;;  %398 = vmatprep.subr.bf16.mxu1 %v511_v0  ;;  %v451_v11 = vld [vmem:[#allocation4] sm:$0xff]   ;;  %v452_v12 = vld [vmem:[#allocation4 + $0x8] sm:$0xff]   ;;  %v453_v13 = vld [vmem:[#allocation4 + $0x10] sm:$0xff]  }
  0x2a   :  { %v454_v14 = vld [vmem:[#allocation4 + $0x18] sm:$0xff]   ;;  %v455_v15 = vld [vmem:[#allocation4 + $0x20] sm:$0xff]   ;;  %v456_v16 = vld [vmem:[#allocation4 + $0x28] sm:$0xff]  }
  0x2b   :  { %393 = vmatmul.mubr.msk.bf16.vlgmr.msra.gmra.mrb[0].mxu0 %vm71_vm1, %v55_v2  ;;  %v349_v17 = vld [vmem:[%s617_s2] ss:$0 sm:$0xff]  ;;  %v457_v25 = vld [vmem:[#allocation4 + $0x30] sm:$0xff]  }
  0x2c   :  { %432 = vmatprep.mubr.msk.bf16.mxu0 %vm512_vm0, %v511_v0  ;;  %399 = vmatpush3.bf16.msra.mxu1 %v444_v4  ;;  %v458_v26 = vld [vmem:[#allocation4 + $0x38] sm:$0xff]  }
  0x2d   :  { %400 = vmatprep.subr.bf16.mxu1 %v511_v0  ;;  %417 = vmatpush3.bf16.msra.mxu0 %v451_v11  ;;  %v352_v27 = vld [vmem:[%s619_s4] ss:$0 sm:$0xff] }
  0x2e   :  { %418 = vmatprep.subr.bf16.mxu0 %v511_v0  ;;  %v361_v35 = vld [vmem:[%s621_s6] ss:$0 sm:$0xff] }
  0x30   :  { %401 = vmatpush3.bf16.msra.mxu1 %v445_v5 }
  0x31   :  { %402 = vmatprep.subr.bf16.mxu1 %v511_v0  ;;  %419 = vmatpush3.bf16.msra.mxu0 %v452_v12 }
  0x32   :  { %420 = vmatprep.subr.bf16.mxu0 %v511_v0 }
  0x34   :  { %403 = vmatpush3.bf16.msra.mxu1 %v446_v6 }
  0x35   :  { %404 = vmatprep.subr.bf16.mxu1 %v511_v0  ;;  %421 = vmatpush3.bf16.msra.mxu0 %v453_v13 }
  0x36   :  { %422 = vmatprep.subr.bf16.mxu0 %v511_v0 }
  0x38   :  { %405 = vmatpush3.bf16.msra.mxu1 %v447_v7 }
  0x39   :  { %406 = vmatprep.subr.bf16.mxu1 %v511_v0  ;;  %423 = vmatpush3.bf16.msra.mxu0 %v454_v14 }
  0x3a   :  { %424 = vmatprep.subr.bf16.mxu0 %v511_v0 }
  0x3c   :  { %407 = vmatpush3.bf16.msra.mxu1 %v448_v8 }
  0x3d   :  { %408 = vmatprep.subr.bf16.mxu1 %v511_v0  ;;  %425 = vmatpush3.bf16.msra.mxu0 %v455_v15 }
  0x3e   :  { %426 = vmatprep.subr.bf16.mxu0 %v511_v0 }
  0x40   :  { %409 = vmatpush3.bf16.msra.mxu1 %v449_v9 }
  0x41   :  { %410 = vmatprep.subr.bf16.mxu1 %v511_v0  ;;  %427 = vmatpush3.bf16.msra.mxu0 %v456_v16 }
  0x42   :  { %428 = vmatprep.subr.bf16.mxu0 %v511_v0 }
  0x44   :  { %411 = vmatpush3.bf16.msra.mxu1 %v450_v10 }
  0x45   :  { %429 = vmatpush3.bf16.msra.mxu0 %v457_v25 }
  0x46   :  { %430 = vmatprep.subr.bf16.mxu0 %v511_v0 }
  0x49   :  { %431 = vmatpush3.bf16.msra.mxu0 %v458_v26 }
  0xfe   :  { %v109_v18 = vpop.f32.mrb[0].mxu0 }
  0xff   :  { %v110_v19 = vadd.f32 %v349_v17, %v109_v18  ;;  %v394_v20 = vpop.f32.mrb[1].mxu0 }
 0x100   :  { %v112_v21 = vpop.f32.mrb[2].mxu0 }
 0x101   :  { %v115_v22 = vmax.f32 %v110_v19, 0.0  ;;  %v395_v23 = vpop.f32.mrb[3].mxu0 }
 0x103   :  { %v116_v24 = vpack.c.bf16 %v115_v22, %v115_v22 }
 0x105   :  { %413 = vmatmul.mubr.bf16.vlgmr.msra.gmra.mrb[0].mxu1 %v116_v24 }
 0x1d8   :  { %v222_v28 = vpop.f32.mrb[0].mxu1 }
 0x1d9   :  { %v223_v29 = vadd.f32 %v352_v27, %v222_v28  ;;  %v414_v30 = vpop.f32.mrb[1].mxu1 }
 0x1da   :  { %v225_v31 = vpop.f32.mrb[2].mxu1 }
 0x1db   :  { %v228_v32 = vmax.f32 %v223_v29, 0.0  ;;  %v415_v33 = vpop.f32.mrb[3].mxu1 }
 0x1dd   :  { %v229_v34 = vpack.c.bf16 %v228_v32, %v228_v32 }
 0x1df   :  { %433 = vmatmul.mubr.bf16.vlgmr.msra.gmra.mrb[4].mxu0 %v229_v34 }
 0x2b2   :  { %v335_v36 = vpop.f32.mrb[4].mxu0 }
 0x2b3   :  { %v336_v37 = vadd.f32 %v361_v35, %v335_v36  ;;  %v434_v38 = vpop.f32.mrb[5].mxu0 }
 0x2b4   :  { %v338_v39 = vpop.f32.mrb[6].mxu0 }
 0x2b5   :  { %342 = vst.msk [vmem:[%s622_s7] sm:$0xff] %vm341_vm2, %v336_v37  ;;  %v435_v40 = vpop.f32.mrb[7].mxu0 }
 0x2b6   :  { %347 = vsyncpa [#allocation3], 1 }
 0x2b7   :  { %348 = vsyncpa [#allocation5], 1 }

</bundles_post_ra>
